<compile_context>
chip_gen: v5e
topology: v5e:2x2
jax: 0.10.0
libtpu: 0.0.40
codegen_flags: <defaults>
</compile_context>

<pallas_src>
import functools

import jax
import jax.numpy as jnp
from jax.experimental import pallas as pl
from jax.experimental.pallas import tpu as pltpu


def _round_up(x: int, m: int) -> int:
    return ((x + m - 1) // m) * m


def _embeddings_kernel(tok_ref, wb_ref, o_ref, *, act):
    tok = tok_ref[...]              # (TB, 1)      f32, batch along sublanes
    w = wb_ref[0:1, :]              # (1, E_out)   f32, emb along lanes
    b = wb_ref[1:2, :]              # (1, E_out)   f32
    out = tok * w + b               # VPU broadcast -> (TB, E_out)
    if act == "relu":
        out = jnp.maximum(out, 0.0)
    elif act == "tanh":
        out = jnp.tanh(out)
    elif act == "sigmoid":
        out = jax.nn.sigmoid(out)
    o_ref[...] = out


class Embeddings:
    """JAX/Pallas re-implementation of utils/trans_ci.py::Embeddings."""

    def __init__(self, emb_size, act=None, initrange=0.01, res=0, key=None):
        if key is None:
            key = jax.random.PRNGKey(0)
        # PyTorch: weight.data.normal_(-initrange, initrange) -> mean=-initrange,
        # std=initrange (reproduced literally; flag if uniform(-r, r) was intended).
        w = jax.random.normal(key, (emb_size, 1), dtype=jnp.float32) * initrange - initrange
        self.weight = w                                    # (E, 1) like nn.Linear(1, E).weight
        self.bias = jnp.zeros((emb_size,), dtype=jnp.float32)
        self.act = act
        self.res = res
        self.raw_emb_size = emb_size
        self.emb_size = emb_size + 1 if res else emb_size  # output width incl. res column

    def __call__(self, tokens):
        tokens = jnp.asarray(tokens, dtype=jnp.float32).reshape(-1)
        B = tokens.shape[0]
        E = self.raw_emb_size
        E_out = self.emb_size                              # E (+1 if res)

        # ---- batch tile size -------------------------------------------------
        #  * ~2 MiB of output per grid step (mem-bound sweet spot, 2x buffered
        #    ~4 MiB -> fits every generation's default scoped VMEM).
        #  * keep >= ~4 grid steps for large B so the "parallel" axis can be
        #    sharded across both v7x TensorCores.
        target_block_bytes = 2 * 1024 * 1024
        tb_bw = max(8, (target_block_bytes // (E_out * 4)) // 8 * 8)
        tb_par = max(8, _round_up(pl.cdiv(B, 4), 8))
        TB = min(tb_bw, tb_par, 8192)                      # multiple of 8 by construction
        grid = (pl.cdiv(B, TB),)                           # ragged tail block masked by Pallas

        tok2d = tokens[:, None]                            # (B, 1) -- no batch padding

        # ---- pack weight/bias into one (2, E_out) constant, folding the res
        # "ones" column in as (w=0, b=1) at column 0.
        col0 = 1 if self.res else 0
        w_row = jnp.zeros((E_out,), dtype=jnp.float32).at[col0:col0 + E].set(
            self.weight.reshape(-1))
        b_row = jnp.zeros((E_out,), dtype=jnp.float32).at[col0:col0 + E].set(self.bias)
        if self.res:
            b_row = b_row.at[0].set(1.0)
        wb = jnp.stack([w_row, b_row], axis=0)             # (2, E_out)

        kernel = functools.partial(_embeddings_kernel, act=self.act)
        out = pl.pallas_call(
            kernel,
            out_shape=jax.ShapeDtypeStruct((B, E_out), jnp.float32),
            grid=grid,
            in_specs=[
                pl.BlockSpec((TB, 1), lambda i: (i, 0)),        # tokens tile
                pl.BlockSpec((2, E_out), lambda i: (0, 0)),     # constant w/b (never re-DMA'd)
            ],
            out_specs=pl.BlockSpec((TB, E_out), lambda i: (i, 0)),   # exact-width output
            compiler_params=pltpu.CompilerParams(
                dimension_semantics=("parallel",),               # megacore-shardable on v7x
            ),
        )(tok2d, wb)
        return out                                           # no wrapper slice needed


if __name__ == "__main__":
    key = jax.random.PRNGKey(0)
    k_tok, k_w = jax.random.split(key)

    B = 8
    EMB = 32
    tokens = jax.random.uniform(k_tok, (B,), dtype=jnp.float32)  # e.g. treatment values

    # plain-JAX reference math for the linear part
    def ref_linear(mod, toks):
        return toks[:, None] * mod.weight.reshape(1, -1) + mod.bias.reshape(1, -1)

    # 1) default config: act=None, res=0
    emb = Embeddings(EMB, act=None, initrange=0.01, res=0, key=k_w)
    out = jax.block_until_ready(emb(tokens))
    assert out.shape == (B, EMB) and out.dtype == jnp.float32
    assert jnp.allclose(out, ref_linear(emb, tokens), atol=1e-6, rtol=1e-6)

    # 2) activation in-kernel
    emb_relu = Embeddings(EMB, act="relu", initrange=0.01, res=0, key=k_w)
    out_relu = jax.block_until_ready(emb_relu(tokens))
    assert out_relu.shape == (B, EMB)
    assert jnp.allclose(out_relu, jnp.maximum(ref_linear(emb_relu, tokens), 0.0),
                        atol=1e-6, rtol=1e-6)

    # 3) res=1 + sigmoid, fully fused in-kernel (cat-then-act ordering)
    emb_res = Embeddings(EMB, act="sigmoid", initrange=0.01, res=1, key=k_w)
    out_res = jax.block_until_ready(emb_res(tokens))
    assert out_res.shape == (B, EMB + 1)
    ref_res = jax.nn.sigmoid(
        jnp.concatenate([jnp.ones((B, 1), jnp.float32), ref_linear(emb_res, tokens)],
                        axis=-1))
    assert jnp.allclose(out_res, ref_res, atol=1e-5, rtol=1e-5)

    # 4) multi-step grid with a ragged last batch block (exercises masked edge writes)
    B2 = 200
    tokens2 = jax.random.uniform(jax.random.PRNGKey(7), (B2,), dtype=jnp.float32)
    emb_big = Embeddings(EMB, act="tanh", initrange=0.01, res=1, key=k_w)
    out_big = jax.block_until_ready(emb_big(tokens2))
    assert out_big.shape == (B2, EMB + 1)
    ref_big = jnp.tanh(
        jnp.concatenate([jnp.ones((B2, 1), jnp.float32), ref_linear(emb_big, tokens2)],
                        axis=-1))
    assert jnp.allclose(out_big, ref_big, atol=1e-5, rtol=1e-5)

    print("KERNEL_OK")
</pallas_src>

<mosaic_0001>
module attributes {stable_mosaic.version = 11 : i64} {
  func.func @_embeddings_kernel(%arg0: i32, %arg1: memref<8x1xf32, #tpu.memory_space<vmem>>, %arg2: memref<2x32xf32, #tpu.memory_space<vmem>>, %arg3: memref<8x32xf32, #tpu.memory_space<vmem>>) attributes {dimension_semantics = [#tpu.dimension_semantics<parallel>], iteration_bounds = array<i64: 1>, scalar_prefetch = 0 : i64, scratch_operands = 0 : i64, tpu.core_type = #tpu.core_type<tc>, window_params = [{transform_indices = @transform_0, window_bounds = array<i64: 8, 1>}, {pipeline_mode = #tpu.pipeline_mode<synchronous>, transform_indices = @transform_1, window_bounds = array<i64: 2, 32>}, {transform_indices = @transform_2, window_bounds = array<i64: 8, 32>}]} {
    %c0 = arith.constant 0 : index
    %c0_0 = arith.constant 0 : index
    %0 = vector.load %arg1[%c0, %c0_0] : memref<8x1xf32, #tpu.memory_space<vmem>>, vector<8x1xf32>
    %c0_1 = arith.constant 0 : index
    %c0_2 = arith.constant 0 : index
    %1 = vector.load %arg2[%c0_1, %c0_2] : memref<2x32xf32, #tpu.memory_space<vmem>>, vector<1x32xf32>
    %c1 = arith.constant 1 : index
    %c0_3 = arith.constant 0 : index
    %2 = vector.load %arg2[%c1, %c0_3] : memref<2x32xf32, #tpu.memory_space<vmem>>, vector<1x32xf32>
    %3 = vector.broadcast %0 : vector<8x1xf32> to vector<8x32xf32>
    %4 = vector.broadcast %1 : vector<1x32xf32> to vector<8x32xf32>
    %5 = arith.mulf %3, %4 : vector<8x32xf32>
    %6 = vector.broadcast %2 : vector<1x32xf32> to vector<8x32xf32>
    %7 = arith.addf %5, %6 : vector<8x32xf32>
    %c0_4 = arith.constant 0 : index
    %c0_5 = arith.constant 0 : index
    %8 = vector.load %arg3[%c0_4, %c0_5] : memref<8x32xf32, #tpu.memory_space<vmem>>, vector<8x32xf32>
    tpu.vector_store %arg3[%c0_4, %c0_5], %7 {strides = array<i32>} : memref<8x32xf32, #tpu.memory_space<vmem>>, vector<8x32xf32>,
    return
  }
  func.func @transform_0(%arg0: i32) -> (i32, i32) {
    %c0_i32 = arith.constant 0 : i32
    %c0_i32_0 = arith.constant 0 : i32
    return %arg0, %c0_i32 : i32, i32
  }
  func.func @transform_1(%arg0: i32) -> (i32, i32) {
    %c0_i32 = arith.constant 0 : i32
    %c0_i32_0 = arith.constant 0 : i32
    %c0_i32_1 = arith.constant 0 : i32
    return %c0_i32, %c0_i32_0 : i32, i32
  }
  func.func @transform_2(%arg0: i32) -> (i32, i32) {
    %c0_i32 = arith.constant 0 : i32
    %c0_i32_0 = arith.constant 0 : i32
    return %arg0, %c0_i32 : i32, i32
  }
}

</mosaic_0001>

<bundles_post_ra>
// kernel: tpu_custom_call.1
= control target key start
LH: loop header
LB: loop body
LE: loop exit
PB: predicated region body
PF: predicated region fallthrough
CT: control target
= control target key end

     0   :  { %v73_v1 = vmov 0   ;;  %s102_s0 = inlined_call_operand.vmem [shape: f32[8,1], index: 0, kind: input, shape index: {}]   ;;  %s103_s1 = inlined_call_operand.vmem [shape: f32[2,32], index: 1, kind: input, shape index: {}]   ;;  %s104_s2 = inlined_call_operand.hbm [shape: f32[8,32], index: 2, kind: output, shape index: {}]  }
   0x1   :  { %v12_v0 = vld [vmem:[%s102_s0] sm:$0xff]  ;;  %44 = vset.pattern.permute.xlu0 %v73_v1 }
   0x2   :  { %7 = vsyncpa [#allocation3], 0  ;;  %17 = vperm.xlu0 %44, %v12_v0   ;;  %v45_v2 = vld [vmem:[%s103_s1] ss:$0 sm:$0xff]  ;;  %v46_v3 = vld [vmem:[%s103_s1 + $0x1] ss:$0 sm:$0xff] }
   0x3   :  { %s74_s15 = smov [#allocation2]   ;;  %s33_s19 = sshll.u32 %s104_s2, 4  ;;  %vm24_vm0 = vcmask 261120   ;;  %s34_s19 = int_to_ptr.hbm [resolvable:$true] %s33_s19 }
   0x4   :  { %s31_s16 = sshll.u32 %s74_s15, 4  ;;  %s32_s16 = int_to_ptr.vmem [resolvable:$true] %s31_s16 }
  0x74   :  { %v18_v4 = vpop.permute.xlu0 %17 }
  0x75   :  { %v21_v5 = vmul.f32 %v45_v2, %v18_v4 }
  0x77   :  { %v23_v6 = vadd.f32 %v46_v3, %v21_v5 }
  0x79   :  { %25 = vst.msk [vmem:[#allocation2] sm:$0xff] %vm24_vm0, %v23_v6 }
  0x7a   :  { %36 = dma.vmem_to_hbm [thread:$0]  %s32_s16, 128, %s34_s19, [#allocation3]  }
  0x7b   :  { %71 = dma.done.wait [#allocation3], 128  }
  0x7c   :  { %72 = vsyncadd [#allocation3], 4294967168 }
  0x7d   :  { %41 = vsyncpa [#allocation3], 1 }

</bundles_post_ra>
